<compile_context>
chip_gen: v6e
topology: v6e:2x2x1
jax: 0.10.0
libtpu: 0.0.40
codegen_flags: <defaults>
</compile_context>

<pallas_src>
import functools
import math

import jax
import jax.numpy as jnp
from jax.experimental import pallas as pl
from jax.experimental.pallas import tpu as pltpu


def _round_up(v, m):
    return ((v + m - 1) // m) * m


def _gcn_kernel(x_ref, w_ref, adj_ref, b_ref, o_ref, *, adj_first):
    # x_ref:   (TB, Cp, F_in)   block of batch elements (Cp = sublane-padded C)
    # w_ref:   (F_in, Fp)       shared weights (Fp = lane-padded F_out)
    # adj_ref: (Cp, Cp)         shared adjacency (dense)
    # b_ref:   (1, Fp)          shared bias row (zeros when module has bias=False)
    # o_ref:   (TB, Cp, Fp)
    tb, c, f_in = x_ref.shape
    f_pad = w_ref.shape[1]

    w = w_ref[...]
    adj = adj_ref[...]
    bias = b_ref[...]

    if tb == 1:
        # Single-graph fast path (exact torch forward): plain 2D MXU matmuls,
        # no reshapes or broadcasts inside the kernel.
        x2d = x_ref[...][0]                                       # (Cp, F_in)
        if adj_first:
            h = jnp.dot(adj, x2d, preferred_element_type=jnp.float32)
            out = jnp.dot(h.astype(w.dtype), w,
                          preferred_element_type=jnp.float32)     # (Cp, Fp)
        else:
            s = jnp.dot(x2d, w, preferred_element_type=jnp.float32)
            out = jnp.dot(adj, s.astype(w.dtype),
                          preferred_element_type=jnp.float32)     # (Cp, Fp)
        o_ref[...] = (out + bias)[None].astype(o_ref.dtype)
        return

    x = x_ref[...]
    adj_b = jnp.broadcast_to(adj[None], (tb, c, c))
    if adj_first:
        # (adj @ x) @ W : adjacency applied on the narrow F_in side, then one
        # tall fused (TB*Cp, F_in) @ (F_in, Fp) MXU matmul.
        h = jnp.einsum('bij,bjk->bik', adj_b, x,
                       preferred_element_type=jnp.float32)        # (TB,Cp,F_in)
        out2d = jnp.dot(h.reshape(tb * c, f_in).astype(w.dtype), w,
                        preferred_element_type=jnp.float32)       # (TB*Cp,Fp)
        out = out2d.reshape(tb, c, f_pad)
    else:
        # adj @ (x @ W) : tall fused weight matmul first, adjacency on Fp side.
        support2d = jnp.dot(x.reshape(tb * c, f_in), w,
                            preferred_element_type=jnp.float32)
        support = support2d.reshape(tb, c, f_pad).astype(w.dtype)
        out = jnp.einsum('bij,bjk->bik', adj_b, support,
                         preferred_element_type=jnp.float32)

    o_ref[...] = (out + bias[None]).astype(o_ref.dtype)


def _choose_block_b(B, Cp, F_in, F_pad, itemsize,
                    row_target=256, vmem_budget=24 * 1024 * 1024):
    """Batch block size: divisor of B, MXU-sized fused rows, VMEM-aware."""
    divs = [d for d in range(1, B + 1) if B % d == 0]

    def fits(d):
        streamed = 2 * d * Cp * (F_in + F_pad) * itemsize       # double-buffered x/out
        resident = (F_in * F_pad + Cp * Cp + F_pad) * itemsize  # W, adj, bias
        return streamed + resident <= vmem_budget

    fitting = [d for d in divs if fits(d)] or [1]
    tb = next((d for d in fitting if d * Cp >= row_target), fitting[-1])
    # Prefer >= 2 grid steps (shards work across v7x's two TensorCores) as
    # long as the fused row count stays MXU-sized.
    if tb == B and B > 1:
        for d in reversed([d for d in fitting if d < B]):
            if d * Cp >= 128:
                tb = d
                break
    return tb


def batch_graph_convolution(x, weight, adj, bias=None, *, block_b=None):
    """x: [B, C, F_in], weight: [F_in, F_out], adj: [C, C], bias: [F_out]|None.

    Returns adj @ (x[b] @ weight) + bias for every batch element b.
    """
    B, C, F_in = x.shape
    F_out = weight.shape[1]
    dtype = x.dtype
    itemsize = jnp.dtype(dtype).itemsize

    # Lane-dense output stores: pad F_out up to a multiple of 128.
    F_pad = max(128, _round_up(F_out, 128))
    # Sublane-friendly node count.
    C_pad = max(8, _round_up(C, 8))

    weight = weight.astype(dtype)
    adj = adj.astype(dtype)
    if F_pad != F_out:
        weight = jnp.pad(weight, ((0, 0), (0, F_pad - F_out)))
    if bias is None:
        bias2d = jnp.zeros((1, F_pad), dtype)
    else:
        bias2d = jnp.pad(bias.astype(dtype), (0, F_pad - F_out)).reshape(1, F_pad)
    if C_pad != C:
        x = jnp.pad(x, ((0, 0), (0, C_pad - C), (0, 0)))
        adj = jnp.pad(adj, ((0, C_pad - C), (0, C_pad - C)))

    if block_b is None:
        block_b = _choose_block_b(B, C_pad, F_in, F_pad, itemsize)
    assert B % block_b == 0

    # Reassociation choice baked at trace time from the actual compute widths.
    adj_first = F_in < F_pad

    out = pl.pallas_call(
        functools.partial(_gcn_kernel, adj_first=adj_first),
        out_shape=jax.ShapeDtypeStruct((B, C_pad, F_pad), dtype),
        grid_spec=pltpu.PrefetchScalarGridSpec(
            num_scalar_prefetch=0,
            grid=(B // block_b,),
            in_specs=[
                pl.BlockSpec((block_b, C_pad, F_in), lambda b: (b, 0, 0)),
                pl.BlockSpec((F_in, F_pad), lambda b: (0, 0)),
                pl.BlockSpec((C_pad, C_pad), lambda b: (0, 0)),
                pl.BlockSpec((1, F_pad), lambda b: (0, 0)),
            ],
            out_specs=pl.BlockSpec((block_b, C_pad, F_pad), lambda b: (b, 0, 0)),
        ),
        compiler_params=pltpu.CompilerParams(
            dimension_semantics=("parallel",),
            vmem_limit_bytes=32 * 1024 * 1024,
        ),
    )(x, weight, adj, bias2d)

    if C_pad != C or F_pad != F_out:
        out = out[:, :C, :F_out]
    return out


def graph_convolution(x, weight, adj, bias=None, **kw):
    """Exact GraphConvolutionLayer.forward: x [N, F_in], adj [N, N]."""
    # TODO(synk): torch.spmm's sparse-adjacency path has no Pallas equivalent
    # here; adj is applied as a dense matmul.
    return batch_graph_convolution(x[None], weight, adj, bias, **kw)[0]


def _ref_batch(x, weight, adj, bias):
    support = jnp.einsum('bnf,fo->bno', x, weight, precision='highest')
    out = jnp.einsum('mn,bno->bmo', adj, support, precision='highest')
    return out if bias is None else out + bias


if __name__ == "__main__":
    key = jax.random.PRNGKey(0)

    def make_inputs(k, B, C, F_in, F_out, with_bias=True):
        k_x, k_adj, k_w, k_b = jax.random.split(k, 4)
        # Parameter init mirroring reset_parameters(): uniform(-stdv, stdv),
        # stdv = 1/sqrt(out_features).
        stdv = 1.0 / math.sqrt(F_out)
        w = jax.random.uniform(k_w, (F_in, F_out), jnp.float32,
                               minval=-stdv, maxval=stdv)
        b = (jax.random.uniform(k_b, (F_out,), jnp.float32,
                                minval=-stdv, maxval=stdv) if with_bias else None)
        x = jax.random.normal(k_x, (B, C, F_in), jnp.float32)
        a = jax.random.uniform(k_adj, (C, C), jnp.float32)
        return x, w, a, b

    k1, k2, k3, _ = jax.random.split(key, 4)

    # 1) Batched, adj-first reassociation (F_in < padded F_out).
    x, w, adj, b = make_inputs(k1, B=2, C=8, F_in=16, F_out=32)
    out = jax.block_until_ready(batch_graph_convolution(x, w, adj, b))
    ref = _ref_batch(x, w, adj, b)
    assert out.shape == (2, 8, 32)
    assert jnp.allclose(out, ref, atol=1e-4, rtol=1e-4)

    # 2) Exact single-graph torch forward(input, adj), same parameters.
    out1 = jax.block_until_ready(graph_convolution(x[0], w, adj, b))
    ref1 = _ref_batch(x[:1], w, adj, b)[0]
    assert out1.shape == (8, 32)
    assert jnp.allclose(out1, ref1, atol=1e-4, rtol=1e-4)

    # 3) Batched, weight-first reassociation + node-count padding.
    x3, w3, adj3, b3 = make_inputs(k2, B=2, C=12, F_in=160, F_out=32)
    out3 = jax.block_until_ready(batch_graph_convolution(x3, w3, adj3, b3))
    assert out3.shape == (2, 12, 32)
    assert jnp.allclose(out3, _ref_batch(x3, w3, adj3, b3), atol=1e-4, rtol=1e-4)

    # 4) Single graph, bias=None, ragged C and F_out (exercises padding/slice).
    x4, w4, adj4, _ = make_inputs(k3, B=1, C=5, F_in=24, F_out=20, with_bias=False)
    out4 = jax.block_until_ready(graph_convolution(x4[0], w4, adj4, None))
    assert out4.shape == (5, 20)
    assert jnp.allclose(out4, _ref_batch(x4, w4, adj4, None)[0], atol=1e-4, rtol=1e-4)

    print("KERNEL_OK")
</pallas_src>

<mosaic_0001>
module attributes {stable_mosaic.version = 11 : i64} {
  func.func @_gcn_kernel(%arg0: i32, %arg1: memref<2x8x16xf32, #tpu.memory_space<vmem>>, %arg2: memref<16x128xf32, #tpu.memory_space<vmem>>, %arg3: memref<8x8xf32, #tpu.memory_space<vmem>>, %arg4: memref<1x128xf32, #tpu.memory_space<vmem>>, %arg5: memref<2x8x128xf32, #tpu.memory_space<vmem>>) attributes {dimension_semantics = [#tpu.dimension_semantics<parallel>], iteration_bounds = array<i64: 1>, scalar_prefetch = 0 : i64, scratch_operands = 0 : i64, tpu.core_type = #tpu.core_type<tc>, window_params = [{transform_indices = @transform_0, window_bounds = array<i64: 2, 8, 16>}, {pipeline_mode = #tpu.pipeline_mode<synchronous>, transform_indices = @transform_1, window_bounds = array<i64: 16, 128>}, {pipeline_mode = #tpu.pipeline_mode<synchronous>, transform_indices = @transform_2, window_bounds = array<i64: 8, 8>}, {pipeline_mode = #tpu.pipeline_mode<synchronous>, transform_indices = @transform_3, window_bounds = array<i64: 1, 128>}, {transform_indices = @transform_4, window_bounds = array<i64: 2, 8, 128>}]} {
    %c0 = arith.constant 0 : index
    %c0_0 = arith.constant 0 : index
    %0 = vector.load %arg2[%c0, %c0_0] : memref<16x128xf32, #tpu.memory_space<vmem>>, vector<16x128xf32>
    %c0_1 = arith.constant 0 : index
    %c0_2 = arith.constant 0 : index
    %1 = vector.load %arg3[%c0_1, %c0_2] : memref<8x8xf32, #tpu.memory_space<vmem>>, vector<8x8xf32>
    %c0_3 = arith.constant 0 : index
    %c0_4 = arith.constant 0 : index
    %2 = vector.load %arg4[%c0_3, %c0_4] : memref<1x128xf32, #tpu.memory_space<vmem>>, vector<1x128xf32>
    %c0_5 = arith.constant 0 : index
    %c0_6 = arith.constant 0 : index
    %c0_7 = arith.constant 0 : index
    %3 = vector.load %arg1[%c0_5, %c0_6, %c0_7] : memref<2x8x16xf32, #tpu.memory_space<vmem>>, vector<2x8x16xf32>
    %4 = vector.shape_cast %1 : vector<8x8xf32> to vector<1x8x8xf32>
    %5 = vector.shape_cast %4 : vector<1x8x8xf32> to vector<1x8x8xf32>
    %6 = vector.broadcast %5 : vector<1x8x8xf32> to vector<2x8x8xf32>
    "tpu.trace_start"() <{level = 10 : i32, message = "bij,bjk->bik"}> : () -> ()
    %cst = arith.constant dense<0.000000e+00> : vector<2x8x16xf32>
    %7 = tpu.matmul %6, %3, %cst {dimension_numbers = #tpu.dot_dimension_numbers<[2], [1], [1], [2], [0, 0, 0, 1, 1, 2], [0], [0]>} : vector<2x8x8xf32>, vector<2x8x16xf32>, vector<2x8x16xf32> -> vector<2x8x16xf32>
    "tpu.trace_stop"() : () -> ()
    %8 = vector.shape_cast %7 : vector<2x8x16xf32> to vector<16x16xf32>
    %cst_8 = arith.constant dense<0.000000e+00> : vector<16x128xf32>
    %9 = tpu.matmul %8, %0, %cst_8 {dimension_numbers = #tpu.dot_dimension_numbers<[1], [0], [0], [1], [0, 0, 1, 1], [], []>} : vector<16x16xf32>, vector<16x128xf32>, vector<16x128xf32> -> vector<16x128xf32>
    %10 = vector.shape_cast %9 : vector<16x128xf32> to vector<2x8x128xf32>
    %11 = vector.shape_cast %2 : vector<1x128xf32> to vector<1x1x128xf32>
    %12 = vector.broadcast %11 : vector<1x1x128xf32> to vector<2x8x128xf32>
    %13 = arith.addf %10, %12 : vector<2x8x128xf32>
    %c0_9 = arith.constant 0 : index
    %c0_10 = arith.constant 0 : index
    %c0_11 = arith.constant 0 : index
    %14 = vector.load %arg5[%c0_9, %c0_10, %c0_11] : memref<2x8x128xf32, #tpu.memory_space<vmem>>, vector<2x8x128xf32>
    tpu.vector_store %arg5[%c0_9, %c0_10, %c0_11], %13 {strides = array<i32>} : memref<2x8x128xf32, #tpu.memory_space<vmem>>, vector<2x8x128xf32>,
    return
  }
  func.func @transform_0(%arg0: i32) -> (i32, i32, i32) {
    %c0_i32 = arith.constant 0 : i32
    %c0_i32_0 = arith.constant 0 : i32
    %c0_i32_1 = arith.constant 0 : i32
    return %arg0, %c0_i32, %c0_i32_0 : i32, i32, i32
  }
  func.func @transform_1(%arg0: i32) -> (i32, i32) {
    %c0_i32 = arith.constant 0 : i32
    %c0_i32_0 = arith.constant 0 : i32
    %c0_i32_1 = arith.constant 0 : i32
    return %c0_i32, %c0_i32_0 : i32, i32
  }
  func.func @transform_2(%arg0: i32) -> (i32, i32) {
    %c0_i32 = arith.constant 0 : i32
    %c0_i32_0 = arith.constant 0 : i32
    %c0_i32_1 = arith.constant 0 : i32
    return %c0_i32, %c0_i32_0 : i32, i32
  }
  func.func @transform_3(%arg0: i32) -> (i32, i32) {
    %c0_i32 = arith.constant 0 : i32
    %c0_i32_0 = arith.constant 0 : i32
    %c0_i32_1 = arith.constant 0 : i32
    return %c0_i32, %c0_i32_0 : i32, i32
  }
  func.func @transform_4(%arg0: i32) -> (i32, i32, i32) {
    %c0_i32 = arith.constant 0 : i32
    %c0_i32_0 = arith.constant 0 : i32
    %c0_i32_1 = arith.constant 0 : i32
    return %arg0, %c0_i32, %c0_i32_0 : i32, i32, i32
  }
}

</mosaic_0001>

<bundles_post_ra>
// kernel: tpu_custom_call.1
= control target key start
LH: loop header
LB: loop body
LE: loop exit
PB: predicated region body
PF: predicated region fallthrough
CT: control target
= control target key end

     0   :  { %9 = vsyncpa [#allocation3], 0  ;;  %s498_s0 = inlined_call_operand.hbm [shape: f32[2,8,16], index: 0, kind: input, shape index: {}]   ;;  %s499_s1 = inlined_call_operand.hbm [shape: f32[16,128], index: 1, kind: input, shape index: {}]   ;;  %s500_s2 = inlined_call_operand.hbm [shape: f32[8,8], index: 2, kind: input, shape index: {}]   ;;  %s501_s3 = inlined_call_operand.vmem [shape: f32[1,128], index: 3, kind: input, shape index: {}]   ;;  %s502_s4 = inlined_call_operand.hbm [shape: f32[2,8,128], index: 4, kind: output, shape index: {}]  }
   0x1   :  { %10 = vsyncpa [#allocation6], 0 }
   0x2   :  { %11 = vsyncpa [#allocation4], 0  ;;  %s441_s15 = smov [#allocation5]   ;;  %s442_s17 = smov [#allocation2]  }
   0x3   :  { %s29_s16 = sshll.u32 %s441_s15, 4  ;;  %s17_s18 = sshll.u32 %s442_s17, 4  ;;  %s30_s16 = int_to_ptr.vmem [resolvable:$true] %s29_s16  ;;  %s18_s18 = int_to_ptr.vmem [resolvable:$true] %s17_s18 }
   0x4   :  { %s363_s19 = scalar_lea.vmem %s30_s16, 256  ;;  %p368_p1 = scmp.lt.s32.totalorder %s30_s16, %s30_s16 }
   0x5   :  { %p364_p0 = scmp.ne.s32.totalorder %s30_s16, %s363_s19  ;;  %p369_p2 = scmp.lt.s32.totalorder %s363_s19, %s363_s19 }
   0x7   :  { %p370_p3 = por %p369_p2, %p368_p1 }
   0x9   :  { %p371_p4 = pnand %p370_p3, %p364_p0 }
   0xb   :  { %374 = shalt.err (!%p371_p4)
}
   0xc   :  { %s443_s20 = smov 128   ;;  %s444_s21 = smov 8  }
   0xd   :  { %35 = dma.hbm_to_vmem [thread:$0]  %s499_s1, 256, %s30_s16, [#allocation6], %s443_s20, %s443_s20, %s444_s21  }
   0xe   :  { %s383_s24 = scalar_lea.vmem %s18_s18, 256  ;;  %p388_p6 = scmp.lt.s32.totalorder %s18_s18, %s18_s18 }
   0xf   :  { %p384_p5 = scmp.ne.s32.totalorder %s18_s18, %s383_s24  ;;  %p389_p7 = scmp.lt.s32.totalorder %s383_s24, %s383_s24 }
  0x11   :  { %p390_p8 = por %p389_p7, %p388_p6 }
  0x13   :  { %p391_p9 = pnand %p390_p8, %p384_p5 }
  0x15   :  { %394 = shalt.err (!%p391_p9)
}
  0x16   :  { %23 = dma.hbm_to_vmem [thread:$0]  %s498_s0, 256, %s18_s18, [#allocation3], %s443_s20, %s443_s20, %s444_s21  }
  0x17   :  { %s445_s27 = smov [#allocation7]  }
  0x18   :  { %s42_s28 = sshll.u32 %s445_s27, 4  ;;  %s43_s28 = int_to_ptr.vmem [resolvable:$true] %s42_s28 }
  0x19   :  { %s403_s29 = scalar_lea.vmem %s43_s28, 128  ;;  %p408_p11 = scmp.lt.s32.totalorder %s43_s28, %s43_s28 }
  0x1a   :  { %p404_p10 = scmp.ne.s32.totalorder %s43_s28, %s403_s29  ;;  %p409_p12 = scmp.lt.s32.totalorder %s403_s29, %s403_s29 }
  0x1c   :  { %p410_p13 = por %p409_p12, %p408_p11 }
  0x1e   :  { %p411_p0 = pnand %p410_p13, %p404_p10 }
  0x20   :  { %414 = shalt.err (!%p411_p0)
}
  0x21   :  { %45 = dma.hbm_to_vmem [thread:$0]  %s500_s2, 128, %s43_s28, [#allocation6]  }
  0x22   :  { %435 = dma.done.wait [#allocation3], 256  }
  0x23   :  { %436 = vsyncadd [#allocation3], 4294967040 }
  0x24   :  { %437 = dma.done.wait [#allocation6], 384  }
  0x25   :  { %438 = vsyncadd [#allocation6], 4294966912  ;;  %v446_v0 = vmov 0.0   ;;  %vm447_vm0 = vmmov 0   ;;  %vm63_vm1 = vcmask 64512   ;;  %v61_v1 = vld [vmem:[#allocation2] sm:$0xff] }
  0x26   :  { %330 = vmatprep.subr.mxu0 %v446_v0  ;;  %335 = vmatprep.subr.mxu1 %v446_v0  ;;  %v62_v2 = vld [vmem:[#allocation2 + $0x8] sm:$0xff]  ;;  %v59_v3 = vld [vmem:[#allocation7] sm:$0xff]  ;;  %v58_v4 = vld [vmem:[#allocation5 + $0x8] sm:$0xff]  ;;  %vm207_vm2 = vcmask 130048   ;;  %s448_s5 = smov [#allocation8]  }
  0x27   :  { %332 = vmatprep.mubr.msk.f32.mxu0 %vm447_vm0, %v446_v0  ;;  %337 = vmatprep.mubr.msk.f32.mxu1 %vm447_vm0, %v446_v0  ;;  %v57_v5 = vld [vmem:[#allocation5] sm:$0xff]  ;;  %v321_v10 = vld [vmem:[%s501_s3] ss:$0 sm:$0xff]  ;;  %s304_s6 = sshll.u32 %s448_s5, 4  ;;  %s305_s6 = int_to_ptr.vmem [resolvable:$true] %s304_s6 }
  0x28   :  { %331 = vmatpush3.msra.mxu0 %v61_v1  ;;  %336 = vmatpush3.msra.mxu1 %v62_v2  ;;  %s415_s7 = scalar_lea.vmem %s305_s6, 256  ;;  %p420_p2 = scmp.lt.s32.totalorder %s305_s6, %s305_s6 }
  0x29   :  { %333 = vmatmul.mubr.msk.f32.vlgmr.msra.gmra.mxu0 %vm63_vm1, %v59_v3  ;;  %338 = vmatmul.mubr.msk.f32.vlgmr.msra.gmra.mxu1 %vm63_vm1, %v59_v3  ;;  %p416_p1 = scmp.ne.s32.totalorder %s305_s6, %s415_s7  ;;  %p421_p3 = scmp.lt.s32.totalorder %s415_s7, %s415_s7 }
  0x2a   :  { %340 = vmatprep.subr.mxu0 %v58_v4 }
  0x2b   :  { %341 = vmatpush3.msra.mxu0 %v58_v4  ;;  %p422_p4 = por %p421_p3, %p420_p2 }
  0x2c   :  { %342 = vmatprep.subr.mxu0 %v57_v5 }
  0x2d   :  { %343 = vmatpush3.msra.mxu0 %v57_v5  ;;  %p423_p5 = pnand %p422_p4, %p416_p1 }
  0xe9   :  { %v133_v6 = vpop.f32.mrf.mxu0  ;;  %v203_v7 = vpop.f32.mrf.mxu1 }
  0xea   :  { %344 = vmatprep.mubr.msk.f32.mxu0 %vm207_vm2, %v133_v6 }
  0xeb   :  { %v334_v8 = vpop.f32.mrf.mxu0  ;;  %v339_v9 = vpop.f32.mrf.mxu1  ;;  %345 = vmatmul.mubr.msk.f32.vlgmr.msra.gmra.mxu0 %vm207_vm2, %v203_v7 }
 0x1ab   :  { %v346_v11 = vpop.f32.mrf.mxu0 }
 0x1ac   :  { %v296_v12 = vadd.f32 %v346_v11, %v321_v10 }
 0x1ad   :  { %v280_v13 = vpop.f32.mrf.mxu0 }
 0x1ae   :  { %298 = vst [vmem:[#allocation8 + $0x8] sm:$0xff] %v296_v12  ;;  %v295_v14 = vadd.f32 %v321_v10, %v280_v13 }
 0x1b0   :  { %297 = vst [vmem:[#allocation8] sm:$0xff] %v295_v14 }
 0x1b1   :  { %426 = shalt.err (!%p423_p5)
}
 0x1b2   :  { %310 = dma.vmem_to_hbm [thread:$0]  %s305_s6, 256, %s502_s4, [#allocation4], %s443_s20, %s443_s20, %s444_s21  }
 0x1b3   :  { %439 = dma.done.wait [#allocation4], 256  }
 0x1b4   :  { %440 = vsyncadd [#allocation4], 4294967040 }
 0x1b5   :  { %314 = vsyncpa [#allocation3], 1 }
 0x1b6   :  { %315 = vsyncpa [#allocation6], 1 }
 0x1b7   :  { %316 = vsyncpa [#allocation4], 1 }

</bundles_post_ra>
